<compile_context>
chip_gen: v5e
topology: v5e:2x2
jax: 0.10.0
libtpu: 0.0.40
codegen_flags: <defaults>
</compile_context>

<pallas_src>
import math
import functools

import jax
import jax.numpy as jnp
from jax.experimental import pallas as pl
from jax.experimental.pallas import tpu as pltpu


# ---------------------------------------------------------------------------
# helpers (usable inside the kernel)
# ---------------------------------------------------------------------------
def _layernorm(x, w, b, eps=1e-5):
    mu = jnp.mean(x, axis=-1, keepdims=True)
    var = jnp.mean((x - mu) ** 2, axis=-1, keepdims=True)
    return (x - mu) * jax.lax.rsqrt(var + eps) * w + b


def _gelu_tanh(x):
    # GELU (tanh approximation) as used in the BERT4Rec-style modules.
    return 0.5 * x * (1.0 + jnp.tanh(math.sqrt(2.0 / math.pi) * (x + 0.044715 * x ** 3)))


# ---------------------------------------------------------------------------
# fused encoder kernel: grid = (batch tiles, layers); x + mask live in VMEM scratch
# ---------------------------------------------------------------------------
def encoder_kernel(embs_ref, logmask_ref, pos_ref, embw_ref, embb_ref,
                   wqkv_ref, bqkv_ref, wo_ref, bo_ref,
                   ln1w_ref, ln1b_ref, ln2w_ref, ln2b_ref,
                   w1_ref, b1_ref, w2_ref, b2_ref,
                   o_ref, x_scr, mask_scr, *, n_heads):
    l = pl.program_id(1)
    n_layers = pl.num_programs(1)
    Bt, S, D = x_scr.shape
    H = n_heads
    dk = D // H
    N = Bt * S

    # ----- layer 0 only (once per batch tile): embeddings + pos emb + emb LayerNorm,
    #       and the additive attention mask (hoisted out of the per-layer body).
    @pl.when(l == 0)
    def _():
        x0 = embs_ref[...].astype(jnp.float32) + pos_ref[...][None, :, :]
        x_scr[...] = _layernorm(x0, embw_ref[0], embb_ref[0])

        key_valid = logmask_ref[...][:, 0, :] != 0                 # (Bt, S) bool
        row = jax.lax.broadcasted_iota(jnp.int32, (S, S), 0)
        col = jax.lax.broadcasted_iota(jnp.int32, (S, S), 1)
        causal = row >= col                                        # (S, S) bool
        keep = jnp.logical_and(key_valid[:, None, :], causal[None, :, :])
        mask_scr[...] = jnp.where(keep, 0.0, -1000000000.0).astype(jnp.float32)

    x = x_scr[...]                                                 # (Bt, S, D) f32
    amask = mask_scr[...]                                          # (Bt, S, S) f32

    # ----- multi-head self-attention sublayer (pre-norm) ----------------------
    h = _layernorm(x, ln1w_ref[0, 0], ln1b_ref[0, 0])
    hb = h.reshape(N, D).astype(jnp.bfloat16)                      # one big MXU slab

    # fused QKV projection: (N, D) @ (D, 3D); 1/sqrt(dk) already folded into Wq
    qkv = jnp.dot(hb, wqkv_ref[0], preferred_element_type=jnp.float32) + bqkv_ref[0, 0]
    q = qkv[:, 0 * D:1 * D].reshape(Bt, S, D).astype(jnp.bfloat16)
    k = qkv[:, 1 * D:2 * D].reshape(Bt, S, D).astype(jnp.bfloat16)
    v = qkv[:, 2 * D:3 * D].reshape(Bt, S, D).astype(jnp.bfloat16)

    ctx_heads = []
    for hd in range(H):
        sl = slice(hd * dk, (hd + 1) * dk)
        scores = jnp.einsum('bqd,bkd->bqk', q[:, :, sl], k[:, :, sl],
                            preferred_element_type=jnp.float32) + amask
        m = jnp.max(scores, axis=-1, keepdims=True)
        e = jnp.exp(scores - m)
        p = e * pl.reciprocal(jnp.sum(e, axis=-1, keepdims=True), approx=True)
        ctx_heads.append(jnp.einsum('bqk,bkd->bqd', p.astype(jnp.bfloat16), v[:, :, sl],
                                    preferred_element_type=jnp.float32))   # (Bt,S,dk)

    # single (N, D) @ (D, D) output projection on the concatenated context
    ctx = jnp.concatenate(ctx_heads, axis=-1).reshape(N, D).astype(jnp.bfloat16)
    attn = jnp.dot(ctx, wo_ref[0], preferred_element_type=jnp.float32) + bo_ref[0, 0]

    x = x + attn.reshape(Bt, S, D)                                 # residual (dropout==id)

    # ----- position-wise feed-forward sublayer (pre-norm) ---------------------
    h2 = _layernorm(x, ln2w_ref[0, 0], ln2b_ref[0, 0])
    h2b = h2.reshape(N, D).astype(jnp.bfloat16)
    ff = jnp.dot(h2b, w1_ref[0], preferred_element_type=jnp.float32) + b1_ref[0, 0]
    ff = _gelu_tanh(ff).astype(jnp.bfloat16)
    ff = jnp.dot(ff, w2_ref[0], preferred_element_type=jnp.float32) + b2_ref[0, 0]

    x = x + ff.reshape(Bt, S, D)                                   # residual (dropout==id)
    x_scr[...] = x

    @pl.when(l == n_layers - 1)
    def _():
        # lane-dense output store: (Bt, 1, S*D) keeps stores/DMA unmasked when D < 128
        o_ref[...] = x.reshape(Bt, 1, S * D).astype(o_ref.dtype)


# ---------------------------------------------------------------------------
# VMEM-budget-driven batch-tile heuristic
# ---------------------------------------------------------------------------
def _vmem_capacity_bytes():
    try:
        return int(pltpu.get_tpu_info().vmem_capacity_bytes)
    except Exception:
        return 64 << 20   # conservative (v7x per-TensorCore VMEM)


def _pick_batch_tile(B, S, D, d_ff, emb_bytes, budget_bytes):
    # streamed per-layer weights, double-buffered (bf16) + small f32 bias/LN params
    w_bytes = 2 * 2 * (D * 3 * D + D * D + D * d_ff + d_ff * D)
    w_bytes += 2 * 4 * (3 * D + D + d_ff + 5 * D)
    best = 1
    for cand in range(1, B + 1):
        if B % cand:
            continue
        if B >= 2 and B // cand < 2:
            continue            # keep >= 2 batch tiles so both v7x TCs get work
        n = cand * S
        use = w_bytes
        use += cand * S * D * 4                 # x_scr (resident activations)
        use += cand * S * S * 4                 # mask_scr
        use += 2 * cand * S * D * emb_bytes     # double-buffered input embs
        use += 2 * cand * S * D * 4             # double-buffered output
        use += 2 * cand * S * 4                 # log_mask
        # generous estimate of live in-kernel temporaries (qkv, q/k/v, ctx, ffn)
        use += n * (3 * D * 4 + 3 * D * 2 + 3 * D * 4 + d_ff * 4 + d_ff * 2)
        use += 3 * cand * S * S * 4             # scores / exp / probs
        if use <= budget_bytes:
            best = cand
    return best


# ---------------------------------------------------------------------------
# wrapper
# ---------------------------------------------------------------------------
def user_encoder_forward(input_embs, log_mask, params, n_heads):
    B, S, D = input_embs.shape
    L = params["wqkv"].shape[0]
    d_ff = params["w1"].shape[-1]
    emb_bytes = jnp.dtype(input_embs.dtype).itemsize

    vmem_cap = _vmem_capacity_bytes()
    # ~45 MiB budget on v7x (64 MiB VMEM/TC), ~80 MiB on v5e/v6e (128 MiB)
    budget = min(int(vmem_cap * 0.7), 80 << 20)
    bt = _pick_batch_tile(B, S, D, d_ff, emb_bytes, budget)
    vmem_limit = int(min(vmem_cap - (4 << 20), budget + (16 << 20)))

    kernel = functools.partial(encoder_kernel, n_heads=n_heads)

    def bspec(shape):      # batch-tiled, constant across the layer axis
        z = (0,) * (len(shape) - 1)
        return pl.BlockSpec(shape, lambda b, l, _z=z: (b,) + _z)

    def cspec(shape):      # fully replicated
        z = (0,) * len(shape)
        return pl.BlockSpec(shape, lambda b, l, _z=z: _z)

    def lspec(shape):      # per-layer stacked weights, streamed along the l axis
        z = (0,) * (len(shape) - 1)
        return pl.BlockSpec(shape, lambda b, l, _z=z: (l,) + _z)

    in_specs = [
        bspec((bt, S, D)),                              # input_embs (native dtype)
        bspec((bt, 1, S)),                              # log_mask  [B,1,S] int32
        cspec((S, D)),                                  # positional embedding
        cspec((1, D)), cspec((1, D)),                   # embedding LayerNorm w/b
        lspec((1, D, 3 * D)), lspec((1, 1, 3 * D)),     # fused Wqkv, bqkv
        lspec((1, D, D)), lspec((1, 1, D)),             # Wo, bo
        lspec((1, 1, D)), lspec((1, 1, D)),             # ln1 w/b
        lspec((1, 1, D)), lspec((1, 1, D)),             # ln2 w/b
        lspec((1, D, d_ff)), lspec((1, 1, d_ff)),       # W1, b1
        lspec((1, d_ff, D)), lspec((1, 1, D)),          # W2, b2
    ]

    out = pl.pallas_call(
        kernel,
        out_shape=jax.ShapeDtypeStruct((B, 1, S * D), jnp.float32),   # lane-dense
        grid=(B // bt, L),
        in_specs=in_specs,
        out_specs=pl.BlockSpec((bt, 1, S * D), lambda b, l: (b, 0, 0)),
        scratch_shapes=[pltpu.VMEM((bt, S, D), jnp.float32),   # resident activations
                        pltpu.VMEM((bt, S, S), jnp.float32)],  # hoisted attention mask
        compiler_params=pltpu.CompilerParams(
            dimension_semantics=("parallel", "arbitrary"),
            vmem_limit_bytes=vmem_limit),
    )(input_embs,
      log_mask.reshape(B, 1, S).astype(jnp.int32),
      params["pos_emb"][:S],
      params["emb_ln_w"], params["emb_ln_b"],
      params["wqkv"], params["bqkv"],
      params["wo"], params["bo"],
      params["ln1w"], params["ln1b"], params["ln2w"], params["ln2b"],
      params["w1"], params["b1"], params["w2"], params["b2"])

    return out.reshape(B, S, D)


# ---------------------------------------------------------------------------
# parameter init (mirrors _init_weights: xavier_normal_ on Linear / Embedding
# weights, zero Linear biases, default LayerNorm params). Per-layer weights
# stacked on a leading L axis, matmul weights stored in bf16, Q/K/V weights
# fused into one (L, D, 3D) tensor with 1/sqrt(dk) folded into the Q slice.
# ---------------------------------------------------------------------------
def init_params(key, d_model, n_heads, n_layers, max_seq_len):
    d_ff = 4 * d_model
    dk = d_model // n_heads
    scale = 1.0 / math.sqrt(dk)

    def xavier_normal(k, out_dim, in_dim):
        std = math.sqrt(2.0 / (in_dim + out_dim))
        return jax.random.normal(k, (out_dim, in_dim), jnp.float32) * std

    keys = jax.random.split(key, 1 + 6 * n_layers)
    pos_emb = xavier_normal(keys[0], max_seq_len, d_model)     # nn.Embedding weight

    wqkv, wo, w1, w2 = [], [], [], []
    for l in range(n_layers):
        ks = keys[1 + 6 * l: 1 + 6 * (l + 1)]
        # nn.Linear stores W as (out, in); kernel computes x @ W^T, so store W^T
        wq_t = xavier_normal(ks[0], d_model, d_model).T * scale   # fold 1/sqrt(dk)
        wk_t = xavier_normal(ks[1], d_model, d_model).T
        wv_t = xavier_normal(ks[2], d_model, d_model).T
        wqkv.append(jnp.concatenate([wq_t, wk_t, wv_t], axis=1))  # (D, 3D)
        wo.append(xavier_normal(ks[3], d_model, d_model).T)
        w1.append(xavier_normal(ks[4], d_ff, d_model).T)          # (D, 4D)
        w2.append(xavier_normal(ks[5], d_model, d_ff).T)          # (4D, D)

    mm = jnp.bfloat16  # MXU-native dtype; accumulation stays f32 in-kernel
    return {
        "pos_emb": pos_emb,
        "emb_ln_w": jnp.ones((1, d_model), jnp.float32),
        "emb_ln_b": jnp.zeros((1, d_model), jnp.float32),
        "wqkv": jnp.stack(wqkv).astype(mm),
        "bqkv": jnp.zeros((n_layers, 1, 3 * d_model), jnp.float32),
        "wo": jnp.stack(wo).astype(mm),
        "bo": jnp.zeros((n_layers, 1, d_model), jnp.float32),
        "w1": jnp.stack(w1).astype(mm),
        "b1": jnp.zeros((n_layers, 1, d_ff), jnp.float32),
        "w2": jnp.stack(w2).astype(mm),
        "b2": jnp.zeros((n_layers, 1, d_model), jnp.float32),
        "ln1w": jnp.ones((n_layers, 1, d_model), jnp.float32),
        "ln1b": jnp.zeros((n_layers, 1, d_model), jnp.float32),
        "ln2w": jnp.ones((n_layers, 1, d_model), jnp.float32),
        "ln2b": jnp.zeros((n_layers, 1, d_model), jnp.float32),
    }


if __name__ == "__main__":
    # small shapes consistent with the module's forward
    B, S, D, H, L = 2, 8, 32, 2, 2          # batch, seq, item_dim, heads, layers

    key = jax.random.PRNGKey(0)
    k_emb, k_par = jax.random.split(key)

    input_embs = jax.random.normal(k_emb, (B, S, D), jnp.float32)
    log_mask = jnp.array([[1, 1, 1, 1, 1, 1, 1, 1],
                          [1, 1, 1, 1, 1, 0, 0, 0]], dtype=jnp.int32)

    params = init_params(k_par, D, H, L, S)

    # TODO(synk): dropout layers are treated as identity (eval mode); training-time
    # dropout has no deterministic Pallas equivalent here.
    out = user_encoder_forward(input_embs, log_mask, params, n_heads=H)
    jax.block_until_ready(out)
    assert out.shape == (B, S, D) and bool(jnp.all(jnp.isfinite(out)))
    print("KERNEL_OK")
</pallas_src>

<mosaic_0001>
module attributes {stable_mosaic.version = 11 : i64} {
  func.func @encoder_kernel(%arg0: i32, %arg1: i32, %arg2: memref<1x8x32xf32, #tpu.memory_space<vmem>>, %arg3: memref<1x1x8xi32, #tpu.memory_space<vmem>>, %arg4: memref<8x32xf32, #tpu.memory_space<vmem>>, %arg5: memref<1x32xf32, #tpu.memory_space<vmem>>, %arg6: memref<1x32xf32, #tpu.memory_space<vmem>>, %arg7: memref<1x32x96xbf16, #tpu.memory_space<vmem>>, %arg8: memref<1x1x96xf32, #tpu.memory_space<vmem>>, %arg9: memref<1x32x32xbf16, #tpu.memory_space<vmem>>, %arg10: memref<1x1x32xf32, #tpu.memory_space<vmem>>, %arg11: memref<1x1x32xf32, #tpu.memory_space<vmem>>, %arg12: memref<1x1x32xf32, #tpu.memory_space<vmem>>, %arg13: memref<1x1x32xf32, #tpu.memory_space<vmem>>, %arg14: memref<1x1x32xf32, #tpu.memory_space<vmem>>, %arg15: memref<1x32x128xbf16, #tpu.memory_space<vmem>>, %arg16: memref<1x1x128xf32, #tpu.memory_space<vmem>>, %arg17: memref<1x128x32xbf16, #tpu.memory_space<vmem>>, %arg18: memref<1x1x32xf32, #tpu.memory_space<vmem>>, %arg19: memref<1x1x256xf32, #tpu.memory_space<vmem>>, %arg20: memref<1x8x32xf32, #tpu.memory_space<vmem>>, %arg21: memref<1x8x8xf32, #tpu.memory_space<vmem>>) attributes {dimension_semantics = [#tpu.dimension_semantics<parallel>, #tpu.dimension_semantics<arbitrary>], iteration_bounds = array<i64: 2, 2>, scalar_prefetch = 0 : i64, scratch_operands = 2 : i64, tpu.core_type = #tpu.core_type<tc>, window_params = [{transform_indices = @transform_0, window_bounds = array<i64: 1, 8, 32>}, {transform_indices = @transform_1, window_bounds = array<i64: 1, 1, 8>}, {pipeline_mode = #tpu.pipeline_mode<synchronous>, transform_indices = @transform_2, window_bounds = array<i64: 8, 32>}, {pipeline_mode = #tpu.pipeline_mode<synchronous>, transform_indices = @transform_3, window_bounds = array<i64: 1, 32>}, {pipeline_mode = #tpu.pipeline_mode<synchronous>, transform_indices = @transform_4, window_bounds = array<i64: 1, 32>}, {transform_indices = @transform_5, window_bounds = array<i64: 1, 32, 96>}, {transform_indices = @transform_6, window_bounds = array<i64: 1, 1, 96>}, {transform_indices = @transform_7, window_bounds = array<i64: 1, 32, 32>}, {transform_indices = @transform_8, window_bounds = array<i64: 1, 1, 32>}, {transform_indices = @transform_9, window_bounds = array<i64: 1, 1, 32>}, {transform_indices = @transform_10, window_bounds = array<i64: 1, 1, 32>}, {transform_indices = @transform_11, window_bounds = array<i64: 1, 1, 32>}, {transform_indices = @transform_12, window_bounds = array<i64: 1, 1, 32>}, {transform_indices = @transform_13, window_bounds = array<i64: 1, 32, 128>}, {transform_indices = @transform_14, window_bounds = array<i64: 1, 1, 128>}, {transform_indices = @transform_15, window_bounds = array<i64: 1, 128, 32>}, {transform_indices = @transform_16, window_bounds = array<i64: 1, 1, 32>}, {transform_indices = @transform_17, window_bounds = array<i64: 1, 1, 256>}]} {
    %c0_i32 = arith.constant 0 : i32
    %0 = arith.cmpi eq, %arg1, %c0_i32 : i32
    %1 = arith.extui %0 : i1 to i32
    %c0_i32_0 = arith.constant 0 : i32
    %2 = arith.cmpi ne, %1, %c0_i32_0 : i32
    scf.if %2 {
      %c0_71 = arith.constant 0 : index
      %c0_72 = arith.constant 0 : index
      %c0_73 = arith.constant 0 : index
      %165 = vector.load %arg2[%c0_71, %c0_72, %c0_73] : memref<1x8x32xf32, #tpu.memory_space<vmem>>, vector<1x8x32xf32>
      %c0_74 = arith.constant 0 : index
      %c0_75 = arith.constant 0 : index
      %166 = vector.load %arg4[%c0_74, %c0_75] : memref<8x32xf32, #tpu.memory_space<vmem>>, vector<8x32xf32>
      %167 = vector.shape_cast %166 : vector<8x32xf32> to vector<1x8x32xf32>
      %168 = arith.addf %165, %167 : vector<1x8x32xf32>
      %c0_76 = arith.constant 0 : index
      %c0_77 = arith.constant 0 : index
      %169 = vector.load %arg5[%c0_76, %c0_77] : memref<1x32xf32, #tpu.memory_space<vmem>>, vector<1x32xf32>
      %170 = vector.shape_cast %169 : vector<1x32xf32> to vector<32xf32>
      %c0_78 = arith.constant 0 : index
      %c0_79 = arith.constant 0 : index
      %171 = vector.load %arg6[%c0_78, %c0_79] : memref<1x32xf32, #tpu.memory_space<vmem>>, vector<1x32xf32>
      %172 = vector.shape_cast %171 : vector<1x32xf32> to vector<32xf32>
      %cst_80 = arith.constant dense<0.000000e+00> : vector<1x8xf32>
      %173 = vector.multi_reduction <add>, %168, %cst_80 [2] : vector<1x8x32xf32> to vector<1x8xf32>
      %174 = vector.shape_cast %173 : vector<1x8xf32> to vector<1x8x1xf32>
      %cst_81 = arith.constant 3.200000e+01 : f32
      %175 = vector.broadcast %cst_81 : f32 to vector<1x8x1xf32>
      %176 = arith.divf %174, %175 : vector<1x8x1xf32>
      %177 = vector.broadcast %176 : vector<1x8x1xf32> to vector<1x8x32xf32>
      %178 = arith.subf %168, %177 : vector<1x8x32xf32>
      %179 = arith.mulf %178, %178 : vector<1x8x32xf32>
      %cst_82 = arith.constant dense<0.000000e+00> : vector<1x8xf32>
      %180 = vector.multi_reduction <add>, %179, %cst_82 [2] : vector<1x8x32xf32> to vector<1x8xf32>
      %181 = vector.shape_cast %180 : vector<1x8xf32> to vector<1x8x1xf32>
      %cst_83 = arith.constant 3.200000e+01 : f32
      %182 = vector.broadcast %cst_83 : f32 to vector<1x8x1xf32>
      %183 = arith.divf %181, %182 : vector<1x8x1xf32>
      %184 = vector.broadcast %176 : vector<1x8x1xf32> to vector<1x8x32xf32>
      %185 = arith.subf %168, %184 : vector<1x8x32xf32>
      %cst_84 = arith.constant 9.99999974E-6 : f32
      %186 = vector.broadcast %cst_84 : f32 to vector<1x8x1xf32>
      %187 = arith.addf %183, %186 : vector<1x8x1xf32>
      %188 = math.rsqrt %187 : vector<1x8x1xf32>
      %189 = vector.broadcast %188 : vector<1x8x1xf32> to vector<1x8x32xf32>
      %190 = arith.mulf %185, %189 : vector<1x8x32xf32>
      %191 = vector.shape_cast %170 : vector<32xf32> to vector<1x1x32xf32>
      %192 = vector.broadcast %191 : vector<1x1x32xf32> to vector<1x8x32xf32>
      %193 = arith.mulf %190, %192 : vector<1x8x32xf32>
      %194 = vector.shape_cast %172 : vector<32xf32> to vector<1x1x32xf32>
      %195 = vector.broadcast %194 : vector<1x1x32xf32> to vector<1x8x32xf32>
      %196 = arith.addf %193, %195 : vector<1x8x32xf32>
      %c0_85 = arith.constant 0 : index
      %c0_86 = arith.constant 0 : index
      %c0_87 = arith.constant 0 : index
      %197 = vector.load %arg20[%c0_85, %c0_86, %c0_87] : memref<1x8x32xf32, #tpu.memory_space<vmem>>, vector<1x8x32xf32>
      tpu.vector_store %arg20[%c0_85, %c0_86, %c0_87], %196 {strides = array<i32>} : memref<1x8x32xf32, #tpu.memory_space<vmem>>, vector<1x8x32xf32>,
      %c0_88 = arith.constant 0 : index
      %c0_89 = arith.constant 0 : index
      %c0_90 = arith.constant 0 : index
      %198 = vector.load %arg3[%c0_88, %c0_89, %c0_90] : memref<1x1x8xi32, #tpu.memory_space<vmem>>, vector<1x1x8xi32>
      %199 = vector.shape_cast %198 : vector<1x1x8xi32> to vector<1x8xi32>
      %c0_i32_91 = arith.constant 0 : i32
      %200 = vector.broadcast %c0_i32_91 : i32 to vector<1x8xi32>
      %201 = arith.cmpi ne, %199, %200 : vector<1x8xi32>
      %202 = tpu.iota {dimensions = array<i32: 0>} : vector<8x8xi32>
      %203 = tpu.iota {dimensions = array<i32: 1>} : vector<8x8xi32>
      %204 = arith.cmpi sge, %202, %203 : vector<8x8xi32>
      %205 = vector.shape_cast %201 : vector<1x8xi1> to vector<1x1x8xi1>
      %206 = vector.shape_cast %204 : vector<8x8xi1> to vector<1x8x8xi1>
      %207 = vector.broadcast %205 : vector<1x1x8xi1> to vector<1x8x8xi1>
      %208 = arith.andi %207, %206 : vector<1x8x8xi1>
      %cst_92 = arith.constant 0.000000e+00 : f32
      %cst_93 = arith.constant -1.000000e+09 : f32
      %209 = vector.broadcast %cst_92 : f32 to vector<1x8x8xf32>
      %210 = vector.broadcast %cst_93 : f32 to vector<1x8x8xf32>
      %211 = arith.select %208, %209, %210 : vector<1x8x8xi1>, vector<1x8x8xf32>
      %c0_94 = arith.constant 0 : index
      %c0_95 = arith.constant 0 : index
      %c0_96 = arith.constant 0 : index
      %212 = vector.load %arg21[%c0_94, %c0_95, %c0_96] : memref<1x8x8xf32, #tpu.memory_space<vmem>>, vector<1x8x8xf32>
      tpu.vector_store %arg21[%c0_94, %c0_95, %c0_96], %211 {strides = array<i32>} : memref<1x8x8xf32, #tpu.memory_space<vmem>>, vector<1x8x8xf32>,
    } else {
    }
    %c0 = arith.constant 0 : index
    %c0_1 = arith.constant 0 : index
    %c0_2 = arith.constant 0 : index
    %3 = vector.load %arg20[%c0, %c0_1, %c0_2] : memref<1x8x32xf32, #tpu.memory_space<vmem>>, vector<1x8x32xf32>
    %c0_3 = arith.constant 0 : index
    %c0_4 = arith.constant 0 : index
    %c0_5 = arith.constant 0 : index
    %4 = vector.load %arg21[%c0_3, %c0_4, %c0_5] : memref<1x8x8xf32, #tpu.memory_space<vmem>>, vector<1x8x8xf32>
    %c0_6 = arith.constant 0 : index
    %c0_7 = arith.constant 0 : index
    %c0_8 = arith.constant 0 : index
    %5 = vector.load %arg11[%c0_6, %c0_7, %c0_8] : memref<1x1x32xf32, #tpu.memory_space<vmem>>, vector<1x1x32xf32>
    %6 = vector.shape_cast %5 : vector<1x1x32xf32> to vector<32xf32>
    %c0_9 = arith.constant 0 : index
    %c0_10 = arith.constant 0 : index
    %c0_11 = arith.constant 0 : index
    %7 = vector.load %arg12[%c0_9, %c0_10, %c0_11] : memref<1x1x32xf32, #tpu.memory_space<vmem>>, vector<1x1x32xf32>
    %8 = vector.shape_cast %7 : vector<1x1x32xf32> to vector<32xf32>
    %cst = arith.constant dense<0.000000e+00> : vector<1x8xf32>
    %9 = vector.multi_reduction <add>, %3, %cst [2] : vector<1x8x32xf32> to vector<1x8xf32>
    %10 = vector.shape_cast %9 : vector<1x8xf32> to vector<1x8x1xf32>
    %cst_12 = arith.constant 3.200000e+01 : f32
    %11 = vector.broadcast %cst_12 : f32 to vector<1x8x1xf32>
    %12 = arith.divf %10, %11 : vector<1x8x1xf32>
    %13 = vector.broadcast %12 : vector<1x8x1xf32> to vector<1x8x32xf32>
    %14 = arith.subf %3, %13 : vector<1x8x32xf32>
    %15 = arith.mulf %14, %14 : vector<1x8x32xf32>
    %cst_13 = arith.constant dense<0.000000e+00> : vector<1x8xf32>
    %16 = vector.multi_reduction <add>, %15, %cst_13 [2] : vector<1x8x32xf32> to vector<1x8xf32>
    %17 = vector.shape_cast %16 : vector<1x8xf32> to vector<1x8x1xf32>
    %cst_14 = arith.constant 3.200000e+01 : f32
    %18 = vector.broadcast %cst_14 : f32 to vector<1x8x1xf32>
    %19 = arith.divf %17, %18 : vector<1x8x1xf32>
    %20 = vector.broadcast %12 : vector<1x8x1xf32> to vector<1x8x32xf32>
    %21 = arith.subf %3, %20 : vector<1x8x32xf32>
    %cst_15 = arith.constant 9.99999974E-6 : f32
    %22 = vector.broadcast %cst_15 : f32 to vector<1x8x1xf32>
    %23 = arith.addf %19, %22 : vector<1x8x1xf32>
    %24 = math.rsqrt %23 : vector<1x8x1xf32>
    %25 = vector.broadcast %24 : vector<1x8x1xf32> to vector<1x8x32xf32>
    %26 = arith.mulf %21, %25 : vector<1x8x32xf32>
    %27 = vector.shape_cast %6 : vector<32xf32> to vector<1x1x32xf32>
    %28 = vector.broadcast %27 : vector<1x1x32xf32> to vector<1x8x32xf32>
    %29 = arith.mulf %26, %28 : vector<1x8x32xf32>
    %30 = vector.shape_cast %8 : vector<32xf32> to vector<1x1x32xf32>
    %31 = vector.broadcast %30 : vector<1x1x32xf32> to vector<1x8x32xf32>
    %32 = arith.addf %29, %31 : vector<1x8x32xf32>
    %33 = vector.shape_cast %32 : vector<1x8x32xf32> to vector<8x32xf32>
    %34 = arith.truncf %33 : vector<8x32xf32> to vector<8x32xbf16>
    %c0_16 = arith.constant 0 : index
    %c0_17 = arith.constant 0 : index
    %c0_18 = arith.constant 0 : index
    %35 = vector.load %arg7[%c0_16, %c0_17, %c0_18] : memref<1x32x96xbf16, #tpu.memory_space<vmem>>, vector<1x32x96xbf16>
    %36 = vector.shape_cast %35 : vector<1x32x96xbf16> to vector<32x96xbf16>
    %cst_19 = arith.constant dense<0.000000e+00> : vector<8x96xf32>
    %37 = tpu.matmul %34, %36, %cst_19 {dimension_numbers = #tpu.dot_dimension_numbers<[1], [0], [0], [1], [0, 0, 1, 1], [], []>} : vector<8x32xbf16>, vector<32x96xbf16>, vector<8x96xf32> -> vector<8x96xf32>
    %c0_20 = arith.constant 0 : index
    %c0_21 = arith.constant 0 : index
    %c0_22 = arith.constant 0 : index
    %38 = vector.load %arg8[%c0_20, %c0_21, %c0_22] : memref<1x1x96xf32, #tpu.memory_space<vmem>>, vector<1x1x96xf32>
    %39 = vector.shape_cast %38 : vector<1x1x96xf32> to vector<96xf32>
    %40 = vector.shape_cast %39 : vector<96xf32> to vector<1x96xf32>
    %41 = vector.broadcast %40 : vector<1x96xf32> to vector<8x96xf32>
    %42 = arith.addf %37, %41 : vector<8x96xf32>
    %43 = vector.extract_strided_slice %42 {offsets = [0, 0], sizes = [8, 32], strides = [1, 1]} : vector<8x96xf32> to vector<8x32xf32>
    %44 = vector.shape_cast %43 : vector<8x32xf32> to vector<1x8x32xf32>
    %45 = arith.truncf %44 : vector<1x8x32xf32> to vector<1x8x32xbf16>
    %46 = vector.extract_strided_slice %42 {offsets = [0, 32], sizes = [8, 32], strides = [1, 1]} : vector<8x96xf32> to vector<8x32xf32>
    %47 = vector.shape_cast %46 : vector<8x32xf32> to vector<1x8x32xf32>
    %48 = arith.truncf %47 : vector<1x8x32xf32> to vector<1x8x32xbf16>
    %49 = vector.extract_strided_slice %42 {offsets = [0, 64], sizes = [8, 32], strides = [1, 1]} : vector<8x96xf32> to vector<8x32xf32>
    %50 = vector.shape_cast %49 : vector<8x32xf32> to vector<1x8x32xf32>
    %51 = arith.truncf %50 : vector<1x8x32xf32> to vector<1x8x32xbf16>
    %52 = vector.extract_strided_slice %45 {offsets = [0, 0, 0], sizes = [1, 8, 16], strides = [1, 1, 1]} : vector<1x8x32xbf16> to vector<1x8x16xbf16>
    %53 = vector.extract_strided_slice %48 {offsets = [0, 0, 0], sizes = [1, 8, 16], strides = [1, 1, 1]} : vector<1x8x32xbf16> to vector<1x8x16xbf16>
    "tpu.trace_start"() <{level = 10 : i32, message = "bqd,bkd->bqk"}> : () -> ()
    %cst_23 = arith.constant dense<0.000000e+00> : vector<1x8x8xf32>
    %54 = tpu.matmul %52, %53, %cst_23 {dimension_numbers = #tpu.dot_dimension_numbers<[2], [2], [1], [1], [0, 0, 0, 1, 1, 1], [0], [0]>} : vector<1x8x16xbf16>, vector<1x8x16xbf16>, vector<1x8x8xf32> -> vector<1x8x8xf32>
    "tpu.trace_stop"() : () -> ()
    %55 = arith.addf %54, %4 : vector<1x8x8xf32>
    %cst_24 = arith.constant dense<0xFF800000> : vector<1x8xf32>
    %56 = vector.multi_reduction <maximumf>, %55, %cst_24 [2] : vector<1x8x8xf32> to vector<1x8xf32>
    %57 = vector.shape_cast %56 : vector<1x8xf32> to vector<1x8x1xf32>
    %58 = vector.broadcast %57 : vector<1x8x1xf32> to vector<1x8x8xf32>
    %59 = arith.subf %55, %58 : vector<1x8x8xf32>
    %60 = math.exp %59 : vector<1x8x8xf32>
    %cst_25 = arith.constant dense<0.000000e+00> : vector<1x8xf32>
    %61 = vector.multi_reduction <add>, %60, %cst_25 [2] : vector<1x8x8xf32> to vector<1x8xf32>
    %62 = vector.shape_cast %61 : vector<1x8xf32> to vector<1x8x1xf32>
    %63 = tpu.reciprocal %62 {approx = true} : vector<1x8x1xf32> -> vector<1x8x1xf32>
    %64 = vector.broadcast %63 : vector<1x8x1xf32> to vector<1x8x8xf32>
    %65 = arith.mulf %60, %64 : vector<1x8x8xf32>
    %66 = arith.truncf %65 : vector<1x8x8xf32> to vector<1x8x8xbf16>
    %67 = vector.extract_strided_slice %51 {offsets = [0, 0, 0], sizes = [1, 8, 16], strides = [1, 1, 1]} : vector<1x8x32xbf16> to vector<1x8x16xbf16>
    "tpu.trace_start"() <{level = 10 : i32, message = "bqk,bkd->bqd"}> : () -> ()
    %cst_26 = arith.constant dense<0.000000e+00> : vector<1x8x16xf32>
    %68 = tpu.matmul %66, %67, %cst_26 {dimension_numbers = #tpu.dot_dimension_numbers<[2], [1], [1], [2], [0, 0, 0, 1, 1, 2], [0], [0]>} : vector<1x8x8xbf16>, vector<1x8x16xbf16>, vector<1x8x16xf32> -> vector<1x8x16xf32>
    "tpu.trace_stop"() : () -> ()
    %69 = vector.extract_strided_slice %45 {offsets = [0, 0, 16], sizes = [1, 8, 16], strides = [1, 1, 1]} : vector<1x8x32xbf16> to vector<1x8x16xbf16>
    %70 = vector.extract_strided_slice %48 {offsets = [0, 0, 16], sizes = [1, 8, 16], strides = [1, 1, 1]} : vector<1x8x32xbf16> to vector<1x8x16xbf16>
    "tpu.trace_start"() <{level = 10 : i32, message = "bqd,bkd->bqk"}> : () -> ()
    %cst_27 = arith.constant dense<0.000000e+00> : vector<1x8x8xf32>
    %71 = tpu.matmul %69, %70, %cst_27 {dimension_numbers = #tpu.dot_dimension_numbers<[2], [2], [1], [1], [0, 0, 0, 1, 1, 1], [0], [0]>} : vector<1x8x16xbf16>, vector<1x8x16xbf16>, vector<1x8x8xf32> -> vector<1x8x8xf32>
    "tpu.trace_stop"() : () -> ()
    %72 = arith.addf %71, %4 : vector<1x8x8xf32>
    %cst_28 = arith.constant dense<0xFF800000> : vector<1x8xf32>
    %73 = vector.multi_reduction <maximumf>, %72, %cst_28 [2] : vector<1x8x8xf32> to vector<1x8xf32>
    %74 = vector.shape_cast %73 : vector<1x8xf32> to vector<1x8x1xf32>
    %75 = vector.broadcast %74 : vector<1x8x1xf32> to vector<1x8x8xf32>
    %76 = arith.subf %72, %75 : vector<1x8x8xf32>
    %77 = math.exp %76 : vector<1x8x8xf32>
    %cst_29 = arith.constant dense<0.000000e+00> : vector<1x8xf32>
    %78 = vector.multi_reduction <add>, %77, %cst_29 [2] : vector<1x8x8xf32> to vector<1x8xf32>
    %79 = vector.shape_cast %78 : vector<1x8xf32> to vector<1x8x1xf32>
    %80 = tpu.reciprocal %79 {approx = true} : vector<1x8x1xf32> -> vector<1x8x1xf32>
    %81 = vector.broadcast %80 : vector<1x8x1xf32> to vector<1x8x8xf32>
    %82 = arith.mulf %77, %81 : vector<1x8x8xf32>
    %83 = arith.truncf %82 : vector<1x8x8xf32> to vector<1x8x8xbf16>
    %84 = vector.extract_strided_slice %51 {offsets = [0, 0, 16], sizes = [1, 8, 16], strides = [1, 1, 1]} : vector<1x8x32xbf16> to vector<1x8x16xbf16>
    "tpu.trace_start"() <{level = 10 : i32, message = "bqk,bkd->bqd"}> : () -> ()
    %cst_30 = arith.constant dense<0.000000e+00> : vector<1x8x16xf32>
    %85 = tpu.matmul %83, %84, %cst_30 {dimension_numbers = #tpu.dot_dimension_numbers<[2], [1], [1], [2], [0, 0, 0, 1, 1, 2], [0], [0]>} : vector<1x8x8xbf16>, vector<1x8x16xbf16>, vector<1x8x16xf32> -> vector<1x8x16xf32>
    "tpu.trace_stop"() : () -> ()
    %86 = tpu.concatenate %68, %85 in 2 : vector<1x8x16xf32>, vector<1x8x16xf32> -> vector<1x8x32xf32>
    %87 = vector.shape_cast %86 : vector<1x8x32xf32> to vector<8x32xf32>
    %88 = arith.truncf %87 : vector<8x32xf32> to vector<8x32xbf16>
    %c0_31 = arith.constant 0 : index
    %c0_32 = arith.constant 0 : index
    %c0_33 = arith.constant 0 : index
    %89 = vector.load %arg9[%c0_31, %c0_32, %c0_33] : memref<1x32x32xbf16, #tpu.memory_space<vmem>>, vector<1x32x32xbf16>
    %90 = vector.shape_cast %89 : vector<1x32x32xbf16> to vector<32x32xbf16>
    %cst_34 = arith.constant dense<0.000000e+00> : vector<8x32xf32>
    %91 = tpu.matmul %88, %90, %cst_34 {dimension_numbers = #tpu.dot_dimension_numbers<[1], [0], [0], [1], [0, 0, 1, 1], [], []>} : vector<8x32xbf16>, vector<32x32xbf16>, vector<8x32xf32> -> vector<8x32xf32>
    %c0_35 = arith.constant 0 : index
    %c0_36 = arith.constant 0 : index
    %c0_37 = arith.constant 0 : index
    %92 = vector.load %arg10[%c0_35, %c0_36, %c0_37] : memref<1x1x32xf32, #tpu.memory_space<vmem>>, vector<1x1x32xf32>
    %93 = vector.shape_cast %92 : vector<1x1x32xf32> to vector<32xf32>
    %94 = vector.shape_cast %93 : vector<32xf32> to vector<1x32xf32>
    %95 = vector.broadcast %94 : vector<1x32xf32> to vector<8x32xf32>
    %96 = arith.addf %91, %95 : vector<8x32xf32>
    %97 = vector.shape_cast %96 : vector<8x32xf32> to vector<1x8x32xf32>
    %98 = arith.addf %3, %97 : vector<1x8x32xf32>
    %c0_38 = arith.constant 0 : index
    %c0_39 = arith.constant 0 : index
    %c0_40 = arith.constant 0 : index
    %99 = vector.load %arg13[%c0_38, %c0_39, %c0_40] : memref<1x1x32xf32, #tpu.memory_space<vmem>>, vector<1x1x32xf32>
    %100 = vector.shape_cast %99 : vector<1x1x32xf32> to vector<32xf32>
    %c0_41 = arith.constant 0 : index
    %c0_42 = arith.constant 0 : index
    %c0_43 = arith.constant 0 : index
    %101 = vector.load %arg14[%c0_41, %c0_42, %c0_43] : memref<1x1x32xf32, #tpu.memory_space<vmem>>, vector<1x1x32xf32>
    %102 = vector.shape_cast %101 : vector<1x1x32xf32> to vector<32xf32>
    %cst_44 = arith.constant dense<0.000000e+00> : vector<1x8xf32>
    %103 = vector.multi_reduction <add>, %98, %cst_44 [2] : vector<1x8x32xf32> to vector<1x8xf32>
    %104 = vector.shape_cast %103 : vector<1x8xf32> to vector<1x8x1xf32>
    %cst_45 = arith.constant 3.200000e+01 : f32
    %105 = vector.broadcast %cst_45 : f32 to vector<1x8x1xf32>
    %106 = arith.divf %104, %105 : vector<1x8x1xf32>
    %107 = vector.broadcast %106 : vector<1x8x1xf32> to vector<1x8x32xf32>
    %108 = arith.subf %98, %107 : vector<1x8x32xf32>
    %109 = arith.mulf %108, %108 : vector<1x8x32xf32>
    %cst_46 = arith.constant dense<0.000000e+00> : vector<1x8xf32>
    %110 = vector.multi_reduction <add>, %109, %cst_46 [2] : vector<1x8x32xf32> to vector<1x8xf32>
    %111 = vector.shape_cast %110 : vector<1x8xf32> to vector<1x8x1xf32>
    %cst_47 = arith.constant 3.200000e+01 : f32
    %112 = vector.broadcast %cst_47 : f32 to vector<1x8x1xf32>
    %113 = arith.divf %111, %112 : vector<1x8x1xf32>
    %114 = vector.broadcast %106 : vector<1x8x1xf32> to vector<1x8x32xf32>
    %115 = arith.subf %98, %114 : vector<1x8x32xf32>
    %cst_48 = arith.constant 9.99999974E-6 : f32
    %116 = vector.broadcast %cst_48 : f32 to vector<1x8x1xf32>
    %117 = arith.addf %113, %116 : vector<1x8x1xf32>
    %118 = math.rsqrt %117 : vector<1x8x1xf32>
    %119 = vector.broadcast %118 : vector<1x8x1xf32> to vector<1x8x32xf32>
    %120 = arith.mulf %115, %119 : vector<1x8x32xf32>
    %121 = vector.shape_cast %100 : vector<32xf32> to vector<1x1x32xf32>
    %122 = vector.broadcast %121 : vector<1x1x32xf32> to vector<1x8x32xf32>
    %123 = arith.mulf %120, %122 : vector<1x8x32xf32>
    %124 = vector.shape_cast %102 : vector<32xf32> to vector<1x1x32xf32>
    %125 = vector.broadcast %124 : vector<1x1x32xf32> to vector<1x8x32xf32>
    %126 = arith.addf %123, %125 : vector<1x8x32xf32>
    %127 = vector.shape_cast %126 : vector<1x8x32xf32> to vector<8x32xf32>
    %128 = arith.truncf %127 : vector<8x32xf32> to vector<8x32xbf16>
    %c0_49 = arith.constant 0 : index
    %c0_50 = arith.constant 0 : index
    %c0_51 = arith.constant 0 : index
    %129 = vector.load %arg15[%c0_49, %c0_50, %c0_51] : memref<1x32x128xbf16, #tpu.memory_space<vmem>>, vector<1x32x128xbf16>
    %130 = vector.shape_cast %129 : vector<1x32x128xbf16> to vector<32x128xbf16>
    %cst_52 = arith.constant dense<0.000000e+00> : vector<8x128xf32>
    %131 = tpu.matmul %128, %130, %cst_52 {dimension_numbers = #tpu.dot_dimension_numbers<[1], [0], [0], [1], [0, 0, 1, 1], [], []>} : vector<8x32xbf16>, vector<32x128xbf16>, vector<8x128xf32> -> vector<8x128xf32>
    %c0_53 = arith.constant 0 : index
    %c0_54 = arith.constant 0 : index
    %c0_55 = arith.constant 0 : index
    %132 = vector.load %arg16[%c0_53, %c0_54, %c0_55] : memref<1x1x128xf32, #tpu.memory_space<vmem>>, vector<1x1x128xf32>
    %133 = vector.shape_cast %132 : vector<1x1x128xf32> to vector<128xf32>
    %134 = vector.shape_cast %133 : vector<128xf32> to vector<1x128xf32>
    %135 = vector.broadcast %134 : vector<1x128xf32> to vector<8x128xf32>
    %136 = arith.addf %131, %135 : vector<8x128xf32>
    %cst_56 = arith.constant 5.000000e-01 : f32
    %137 = vector.broadcast %cst_56 : f32 to vector<8x128xf32>
    %138 = arith.mulf %137, %136 : vector<8x128xf32>
    %139 = arith.mulf %136, %136 : vector<8x128xf32>
    %140 = arith.mulf %136, %139 : vector<8x128xf32>
    %cst_57 = arith.constant 4.471500e-02 : f32
    %141 = vector.broadcast %cst_57 : f32 to vector<8x128xf32>
    %142 = arith.mulf %141, %140 : vector<8x128xf32>
    %143 = arith.addf %136, %142 : vector<8x128xf32>
    %cst_58 = arith.constant 0.797884583 : f32
    %144 = vector.broadcast %cst_58 : f32 to vector<8x128xf32>
    %145 = arith.mulf %144, %143 : vector<8x128xf32>
    %146 = math.tanh %145 : vector<8x128xf32>
    %cst_59 = arith.constant 1.000000e+00 : f32
    %147 = vector.broadcast %cst_59 : f32 to vector<8x128xf32>
    %148 = arith.addf %147, %146 : vector<8x128xf32>
    %149 = arith.mulf %138, %148 : vector<8x128xf32>
    %150 = arith.truncf %149 : vector<8x128xf32> to vector<8x128xbf16>
    %c0_60 = arith.constant 0 : index
    %c0_61 = arith.constant 0 : index
    %c0_62 = arith.constant 0 : index
    %151 = vector.load %arg17[%c0_60, %c0_61, %c0_62] : memref<1x128x32xbf16, #tpu.memory_space<vmem>>, vector<1x128x32xbf16>
    %152 = vector.shape_cast %151 : vector<1x128x32xbf16> to vector<128x32xbf16>
    %cst_63 = arith.constant dense<0.000000e+00> : vector<8x32xf32>
    %153 = tpu.matmul %150, %152, %cst_63 {dimension_numbers = #tpu.dot_dimension_numbers<[1], [0], [0], [1], [0, 0, 1, 1], [], []>} : vector<8x128xbf16>, vector<128x32xbf16>, vector<8x32xf32> -> vector<8x32xf32>
    %c0_64 = arith.constant 0 : index
    %c0_65 = arith.constant 0 : index
    %c0_66 = arith.constant 0 : index
    %154 = vector.load %arg18[%c0_64, %c0_65, %c0_66] : memref<1x1x32xf32, #tpu.memory_space<vmem>>, vector<1x1x32xf32>
    %155 = vector.shape_cast %154 : vector<1x1x32xf32> to vector<32xf32>
    %156 = vector.shape_cast %155 : vector<32xf32> to vector<1x32xf32>
    %157 = vector.broadcast %156 : vector<1x32xf32> to vector<8x32xf32>
    %158 = arith.addf %153, %157 : vector<8x32xf32>
    %159 = vector.shape_cast %158 : vector<8x32xf32> to vector<1x8x32xf32>
    %160 = arith.addf %98, %159 : vector<1x8x32xf32>
    %c0_67 = arith.constant 0 : index
    %c0_68 = arith.constant 0 : index
    %c0_69 = arith.constant 0 : index
    %161 = vector.load %arg20[%c0_67, %c0_68, %c0_69] : memref<1x8x32xf32, #tpu.memory_space<vmem>>, vector<1x8x32xf32>
    tpu.vector_store %arg20[%c0_67, %c0_68, %c0_69], %160 {strides = array<i32>} : memref<1x8x32xf32, #tpu.memory_space<vmem>>, vector<1x8x32xf32>,
    %c1_i32 = arith.constant 1 : i32
    %162 = arith.cmpi eq, %arg1, %c1_i32 : i32
    %163 = arith.extui %162 : i1 to i32
    %c0_i32_70 = arith.constant 0 : i32
    %164 = arith.cmpi ne, %163, %c0_i32_70 : i32
    scf.if %164 {
      %165 = vector.shape_cast %160 : vector<1x8x32xf32> to vector<1x1x256xf32>
      %c0_71 = arith.constant 0 : index
      %c0_72 = arith.constant 0 : index
      %c0_73 = arith.constant 0 : index
      %166 = vector.load %arg19[%c0_71, %c0_72, %c0_73] : memref<1x1x256xf32, #tpu.memory_space<vmem>>, vector<1x1x256xf32>
      tpu.vector_store %arg19[%c0_71, %c0_72, %c0_73], %165 {strides = array<i32>} : memref<1x1x256xf32, #tpu.memory_space<vmem>>, vector<1x1x256xf32>,
    } else {
    }
    return
  }
  func.func @transform_0(%arg0: i32, %arg1: i32) -> (i32, i32, i32) {
    %c0_i32 = arith.constant 0 : i32
    %c0_i32_0 = arith.constant 0 : i32
    %c0_i32_1 = arith.constant 0 : i32
    return %arg0, %c0_i32, %c0_i32_0 : i32, i32, i32
  }
  func.func @transform_1(%arg0: i32, %arg1: i32) -> (i32, i32, i32) {
    %c0_i32 = arith.constant 0 : i32
    %c0_i32_0 = arith.constant 0 : i32
    %c0_i32_1 = arith.constant 0 : i32
    return %arg0, %c0_i32, %c0_i32_0 : i32, i32, i32
  }
  func.func @transform_2(%arg0: i32, %arg1: i32) -> (i32, i32) {
    %c0_i32 = arith.constant 0 : i32
    %c0_i32_0 = arith.constant 0 : i32
    %c0_i32_1 = arith.constant 0 : i32
    return %c0_i32, %c0_i32_0 : i32, i32
  }
  func.func @transform_3(%arg0: i32, %arg1: i32) -> (i32, i32) {
    %c0_i32 = arith.constant 0 : i32
    %c0_i32_0 = arith.constant 0 : i32
    %c0_i32_1 = arith.constant 0 : i32
    return %c0_i32, %c0_i32_0 : i32, i32
  }
  func.func @transform_4(%arg0: i32, %arg1: i32) -> (i32, i32) {
    %c0_i32 = arith.constant 0 : i32
    %c0_i32_0 = arith.constant 0 : i32
    %c0_i32_1 = arith.constant 0 : i32
    return %c0_i32, %c0_i32_0 : i32, i32
  }
  func.func @transform_5(%arg0: i32, %arg1: i32) -> (i32, i32, i32) {
    %c0_i32 = arith.constant 0 : i32
    %c0_i32_0 = arith.constant 0 : i32
    %c0_i32_1 = arith.constant 0 : i32
    return %arg1, %c0_i32, %c0_i32_0 : i32, i32, i32
  }
  func.func @transform_6(%arg0: i32, %arg1: i32) -> (i32, i32, i32) {
    %c0_i32 = arith.constant 0 : i32
    %c0_i32_0 = arith.constant 0 : i32
    %c0_i32_1 = arith.constant 0 : i32
    return %arg1, %c0_i32, %c0_i32_0 : i32, i32, i32
  }
  func.func @transform_7(%arg0: i32, %arg1: i32) -> (i32, i32, i32) {
    %c0_i32 = arith.constant 0 : i32
    %c0_i32_0 = arith.constant 0 : i32
    %c0_i32_1 = arith.constant 0 : i32
    return %arg1, %c0_i32, %c0_i32_0 : i32, i32, i32
  }
  func.func @transform_8(%arg0: i32, %arg1: i32) -> (i32, i32, i32) {
    %c0_i32 = arith.constant 0 : i32
    %c0_i32_0 = arith.constant 0 : i32
    %c0_i32_1 = arith.constant 0 : i32
    return %arg1, %c0_i32, %c0_i32_0 : i32, i32, i32
  }
  func.func @transform_9(%arg0: i32, %arg1: i32) -> (i32, i32, i32) {
    %c0_i32 = arith.constant 0 : i32
    %c0_i32_0 = arith.constant 0 : i32
    %c0_i32_1 = arith.constant 0 : i32
    return %arg1, %c0_i32, %c0_i32_0 : i32, i32, i32
  }
  func.func @transform_10(%arg0: i32, %arg1: i32) -> (i32, i32, i32) {
    %c0_i32 = arith.constant 0 : i32
    %c0_i32_0 = arith.constant 0 : i32
    %c0_i32_1 = arith.constant 0 : i32
    return %arg1, %c0_i32, %c0_i32_0 : i32, i32, i32
  }
  func.func @transform_11(%arg0: i32, %arg1: i32) -> (i32, i32, i32) {
    %c0_i32 = arith.constant 0 : i32
    %c0_i32_0 = arith.constant 0 : i32
    %c0_i32_1 = arith.constant 0 : i32
    return %arg1, %c0_i32, %c0_i32_0 : i32, i32, i32
  }
  func.func @transform_12(%arg0: i32, %arg1: i32) -> (i32, i32, i32) {
    %c0_i32 = arith.constant 0 : i32
    %c0_i32_0 = arith.constant 0 : i32
    %c0_i32_1 = arith.constant 0 : i32
    return %arg1, %c0_i32, %c0_i32_0 : i32, i32, i32
  }
  func.func @transform_13(%arg0: i32, %arg1: i32) -> (i32, i32, i32) {
    %c0_i32 = arith.constant 0 : i32
    %c0_i32_0 = arith.constant 0 : i32
    %c0_i32_1 = arith.constant 0 : i32
    return %arg1, %c0_i32, %c0_i32_0 : i32, i32, i32
  }
  func.func @transform_14(%arg0: i32, %arg1: i32) -> (i32, i32, i32) {
    %c0_i32 = arith.constant 0 : i32
    %c0_i32_0 = arith.constant 0 : i32
    %c0_i32_1 = arith.constant 0 : i32
    return %arg1, %c0_i32, %c0_i32_0 : i32, i32, i32
  }
  func.func @transform_15(%arg0: i32, %arg1: i32) -> (i32, i32, i32) {
    %c0_i32 = arith.constant 0 : i32
    %c0_i32_0 = arith.constant 0 : i32
    %c0_i32_1 = arith.constant 0 : i32
    return %arg1, %c0_i32, %c0_i32_0 : i32, i32, i32
  }
  func.func @transform_16(%arg0: i32, %arg1: i32) -> (i32, i32, i32) {
    %c0_i32 = arith.constant 0 : i32
    %c0_i32_0 = arith.constant 0 : i32
    %c0_i32_1 = arith.constant 0 : i32
    return %arg1, %c0_i32, %c0_i32_0 : i32, i32, i32
  }
  func.func @transform_17(%arg0: i32, %arg1: i32) -> (i32, i32, i32) {
    %c0_i32 = arith.constant 0 : i32
    %c0_i32_0 = arith.constant 0 : i32
    %c0_i32_1 = arith.constant 0 : i32
    return %arg0, %c0_i32, %c0_i32_0 : i32, i32, i32
  }
}

</mosaic_0001>

<bundles_post_ra>
// kernel: tpu_custom_call.1
= control target key start
LH: loop header
LB: loop body
LE: loop exit
PB: predicated region body
PF: predicated region fallthrough
CT: control target
= control target key end

     0   :  { %s2258_s0 = inlined_call_operand.vmem [shape: f32[2,8,32], index: 0, kind: input, shape index: {}]   ;;  %s2259_s1 = inlined_call_operand.vmem [shape: s32[2,1,8], index: 1, kind: input, shape index: {}]   ;;  %s2260_s2 = inlined_call_operand.vmem [shape: f32[8,32], index: 2, kind: input, shape index: {}]   ;;  %s2261_s3 = inlined_call_operand.vmem [shape: f32[1,32], index: 3, kind: input, shape index: {}]   ;;  %s2262_s4 = inlined_call_operand.vmem [shape: f32[1,32], index: 4, kind: input, shape index: {}]   ;;  %s2263_s5 = inlined_call_operand.vmem [shape: bf16[2,32,96], index: 5, kind: input, shape index: {}]   ;;  %s2264_s6 = inlined_call_operand.vmem [shape: f32[2,1,96], index: 6, kind: input, shape index: {}]   ;;  %s2265_s7 = inlined_call_operand.vmem [shape: bf16[2,32,32], index: 7, kind: input, shape index: {}]   ;;  %s2266_s8 = inlined_call_operand.vmem [shape: f32[2,1,32], index: 8, kind: input, shape index: {}]   ;;  %s2267_s9 = inlined_call_operand.vmem [shape: f32[2,1,32], index: 9, kind: input, shape index: {}]   ;;  %s2268_s10 = inlined_call_operand.vmem [shape: f32[2,1,32], index: 10, kind: input, shape index: {}]   ;;  %s2269_s11 = inlined_call_operand.vmem [shape: f32[2,1,32], index: 11, kind: input, shape index: {}]   ;;  %s2270_s12 = inlined_call_operand.vmem [shape: f32[2,1,32], index: 12, kind: input, shape index: {}]   ;;  %s2271_s13 = inlined_call_operand.vmem [shape: bf16[2,32,128], index: 13, kind: input, shape index: {}]   ;;  %s2272_s14 = inlined_call_operand.vmem [shape: f32[2,1,128], index: 14, kind: input, shape index: {}]   ;;  %s2273_s15 = inlined_call_operand.vmem [shape: bf16[2,128,32], index: 15, kind: input, shape index: {}]   ;;  %s2274_s16 = inlined_call_operand.vmem [shape: f32[2,1,32], index: 16, kind: input, shape index: {}]   ;;  %s2275_s17 = inlined_call_operand.hbm [shape: f32[2,1,256], index: 17, kind: output, shape index: {}]  }
   0x1   :  { %2292 = sst [smem:[#allocation21_spill]] %s2258_s0 }
   0x2   :  { %2293 = sst [smem:[#allocation22_spill]] %s2259_s1 }
   0x3   :  { %2294 = sst [smem:[#allocation23_spill]] %s2260_s2 }
   0x4   :  { %2295 = sst [smem:[#allocation24_spill]] %s2261_s3 }
   0x5   :  { %2296 = sst [smem:[#allocation25_spill]] %s2262_s4 }
   0x6   :  { %2297 = sst [smem:[#allocation26_spill]] %s2263_s5 }
   0x7   :  { %2298 = sst [smem:[#allocation27_spill]] %s2265_s7 }
   0x8   :  { %2299 = sst [smem:[#allocation28_spill]] %s2269_s11 }
   0x9   :  { %2300 = sst [smem:[#allocation29_spill]] %s2273_s15 }
   0xa   :  { %2301 = sst [smem:[#allocation30_spill]] %s2274_s16 }
   0xb   :  { %2302 = sst [smem:[#allocation31_spill]] %s2275_s17 }
   0xc   :  { %22 = vsyncpa [#allocation5], 0 }
   0xd   :  { %24 = vsyncpa [#allocation5 + $0x1], 0  ;;  %s1946_s24 = smov 0   ;;  %s1948_s25 = smov 0  }
   0xe   :  { %s1950_s26 = smov 0   ;;  %s1952_s27 = smov 0  }
   0xf   :  { %s1954_s28 = smov 0   ;;  %s1956_s29 = smov 0  }
  0x10   :  { %s1958_s0 = smov 0   ;;  %s1960_s30 = smov 0  }
  0x11 LB: > { %2303 = sst [smem:[#allocation7_spill]] %s1811_s24  ;;  %s1527_s18 = sadd.s32 4294967295, %s1839_s30   ;;  %s1839_s30 = sphi %s1960_s30, %s30_s30   ;;  %s1835_s0 = sphi %s1958_s0, %s2355_s0   ;;  %s1831_s29 = sphi %s1956_s29, %s2354_s29   ;;  %s1827_s28 = sphi %s1954_s28, %s2353_s28   ;;  %s1823_s27 = sphi %s1952_s27, %s2352_s27   ;;  %s1819_s26 = sphi %s1950_s26, %s2351_s26   ;;  %s1815_s25 = sphi %s1948_s25, %s2350_s25   ;;  %s1811_s24 = sphi %s1946_s24, %s2349_s24  }
  0x12   : > { %2304 = sst [smem:[#allocation8_spill]] %s1815_s25  ;;  %s1528_s19 = sadd.s32 4294967294, %s1839_s30  }
  0x13   : > { %2305 = sst [smem:[#allocation9_spill]] %s1819_s26  ;;  %s39_s1 = sadd.s32 1, %s1831_s29 }
  0x14   : > { %2306 = sst [smem:[#allocation10_spill]] %s1823_s27  ;;  %p40_p0 = scmp.ge.s32.totalorder %s39_s1, 2 }
  0x15   : > { %2307 = sst [smem:[#allocation11_spill]] %s1827_s28  ;;  %s42_s20 = sadd.s32 1, %s1835_s0 }
  0x16   : > { %2308 = sst [smem:[#allocation12_spill]] %s1831_s29  ;;  %p486_p1 = scmp.ne.s32.totalorder %s1819_s26, %s1815_s25 }
  0x17   : > { %2309 = sst [smem:[#allocation13_spill]] %s1835_s0  ;;  %p487_p2 = scmp.eq.s32.totalorder %s1527_s18, 3 }
  0x18   : > { %2310 = sst [smem:[#allocation14_spill]] %s1839_s30  ;;  %s2357_s1 = smov (%p40_p0, %s39_s1), 0 }
  0x19   : > { %2311 = sst [smem:[#allocation15_spill]] %s2357_s1  ;;  %s2359_s20 = smov (!%p40_p0, %s42_s20), %s1835_s0 }
  0x1a   : > { %p1995_p3 = por %p487_p2, %p486_p1  ;;  %p492_p4 = scmp.ne.s32.totalorder %s1815_s25, %s1811_s24 }
  0x1b   : > { %p44_p5 = scmp.ge.s32.totalorder %s2359_s20, 2  ;;  %p493_p6 = scmp.eq.s32.totalorder %s1528_s19, 3 }
  0x1c   : > { %s2312_s21 = scalar_select %p1995_p3, 1, 0 }
  0x1d   : > { %p1531_p7 = scmp.ge.s32.totalorder %s1839_s30, 1  ;;  %p613_p8 = scmp.lt.s32.totalorder %s1839_s30, 5 }
  0x1e   : > { %2313 = sst [smem:[#allocation16_spill]] %s2312_s21  ;;  %s2361_s20 = smov (%p44_p5, %s2359_s20), 0 }
  0x1f   : > { %2314 = sst [smem:[#allocation17_spill]] %s2361_s20  ;;  %p2005_p9 = por %p493_p6, %p492_p4 }
  0x20   : > { %p614_p10 = pnand %p1531_p7, %p613_p8  ;;  %s473_s23 = ssub.s32 %s1835_s0, %s2361_s20 }
  0x21   : > { %s2315_s22 = scalar_select %p2005_p9, 1, 0 }
  0x22   : > { %s476_s18 = sadd.s32 1, %s1819_s26  ;;  %p474_p11 = scmp.eq.s32.totalorder %s473_s23, 0 }
  0x23   : > { %2316 = sst [smem:[#allocation18_spill]] %s2315_s22  ;;  %617 = sbr.rel (%p614_p10) target bundleno = 2766 (0xace), region = 88 }
  0x24   : > { %s2013_s1 = scalar_select %p474_p11, %s1819_s26, %s476_s18  }
  0x26   : > { %2317 = sst [smem:[#allocation19_spill]] %s2013_s1 }
  0x28   : > { %s2278_s19 = sand.u32 1, %s1815_s25   ;;  %p711_p12 = scmp.lt.s32.totalorder %s1827_s28, 1 }
  0x29   : > { %s2019_s29 = sshll.u32 %s2278_s19, 1  ;;  %p718_p13 = scmp.lt.s32.totalorder %s1823_s27, 1 }
  0x2a   : > { %s2023_s22 = scalar_select %p711_p12, %s1827_s28, 1 }
  0x2b   : > { %s2026_s23 = scalar_select %p718_p13, %s1823_s27, 1 }
  0x2c   : > { %s1533_s18 = sshll.u32 %s2023_s22, 3  ;;  %s2319_s30 = sld [smem:[#allocation21_spill]] }
  0x2d   : > { %s1611_s21 = sshll.u32 %s2026_s23, 4  ;;  %s2320_s5 = sld [smem:[#allocation26_spill]] }
  0x2e   : > { %s2321_s7 = sld [smem:[#allocation27_spill]]  ;;  %s745_s16 = scalar_lea.vmem %s2270_s12, %s2026_s23 }
  0x2f   : > { %s2074_s0 = scalar_lea.vmem %s2271_s13, %s1611_s21  ;;  %s1614_s24 = sshll.u32 %s2026_s23, 6 }
  0x30   : > { %s2324_s1 = sld [smem:[#allocation30_spill]]  ;;  %s710_s27 = scalar_lea.vmem [#allocation4], %s2019_s29 }
  0x31   : > { %s2325_s3 = sld [smem:[#allocation29_spill]] }
  0x32   : > { %s714_s17 = scalar_lea.vmem %s2319_s30, %s1533_s18  ;;  %s753_s30 = scalar_lea.vmem %s2272_s14, %s2026_s23 }
  0x33   : > { %s2040_s4 = scalar_lea.vmem %s2320_s5, %s1611_s21  ;;  %s2326_s15 = sld [smem:[#allocation10_spill]] }
  0x34   : > { %s2049_s20 = scalar_lea.vmem %s2321_s7, %s1611_s21 }
  0x35   : > { %2322 = sst [smem:[#allocation20_spill]] %s2049_s20 }
  0x36   : > { %s761_s18 = scalar_lea.vmem %s2324_s1, %s2026_s23 }
  0x37   : > { %s2088_s11 = scalar_lea.vmem %s2325_s3, %s1614_s24 }
  0x39   : > { %p1542_p0 = scmp.ne.s32.totalorder %s2326_s15, 0 }
  0x3a   : > { %s2327_s20 = sld [smem:[#allocation23_spill]] (!%p1542_p0) }
  0x3b   : > { %766 = sbr.rel (%p1542_p0) target bundleno = 337 (0x151), region = 92  ;;  %s2328_s24 = sld [smem:[#allocation22_spill]] (!%p1542_p0) }
  0x3c   : > { %s2330_s26 = sld [smem:[#allocation24_spill]] (!%p1542_p0) }
  0x3d   : > { %s2331_s5 = sld [smem:[#allocation25_spill]] (!%p1542_p0) }
  0x40   : > { %v767_v0 = vld [vmem:[%s714_s17] sm:$0xff]  ;;  %vm772_vm0 = vcmask 261120   ;;  %v1841_v4 = vmov 32.0   ;;  %v813_v17 = vlaneseq  ;;  %v1842_v18 = vmov 0  }
  0x41   : > { %v768_v1 = vld [vmem:[%s2327_s20] sm:$0xff]  ;;  %1717 = vrcp.f32 %v1841_v4  ;;  %s2329_s3 = scalar_lea.vmem %s2328_s24, %s2023_s22  ;;  %v1843_v23 = vmov -1e+09   ;;  %vm823_vm6 = vcmask 64512  }
  0x42   : > { %v769_v2 = vadd.f32 %v768_v1, %v767_v0  ;;  %v811_v16 = vld [vmem:[%s2329_s3] sm:$0x1]  ;;  %v814_v20 = vshrl.u32 %v813_v17, 7  ;;  %v816_v21 = vand.u32 127, %v813_v17 }
  0x43   : > { %vm812_vm2 = vcmp.ne.s32.totalorder %v811_v16, 0  ;;  %v1715_v34 = vld [vmem:[%s2330_s26] ss:$0 sm:$0xff] }
  0x44   : > { %v773_v3 = vsel %vm772_vm0, %v769_v2, 0.0  ;;  %v818_v19 = vsel %vm812_vm2, 1, %v1842_v18  ;;  %vm817_vm3 = vcmp.ge.s32.totalorder %v814_v20, %v816_v21  ;;  %v1716_v36 = vld [vmem:[%s2331_s5] ss:$0 sm:$0xff] }
  0x45   : > { %774 = vadd.xlane.f32.xlu0 %v773_v3  ;;  %v819_v22 = vperm.slane %v818_v19, 0 }
  0x47   : > { %v1718_v5 = vpop.eup %1717  ;;  %vm820_vm4 = vcmp.eq.s32.totalorder %v819_v22, 1 }
  0x48   : > { %v777_v6 = vmul.f32 32.0, %v1718_v5  ;;  %vm781_vm1 = vweird.f32 %v1718_v5  ;;  %vm821_vm5 = vmand %vm820_vm4, %vm817_vm3 }
  0x49   : > { %v822_v24 = vsel %vm821_vm5, 0.0, %v1843_v23 }
  0x4a   : > { %v778_v7 = vsub.f32 1.0, %v777_v6  ;;  %824 = vst.msk [vmem:[#allocation3] sm:$0xff] %vm823_vm6, %v822_v24 }
  0x4c   : > { %v779_v8 = vmul.f32 %v1718_v5, %v778_v7 }
  0x4e   : > { %v780_v9 = vadd.f32 %v1718_v5, %v779_v8 }
  0x50   : > { %v782_v10 = vsel %vm781_vm1, %v1718_v5, %v780_v9 }
  0xb8   : > { %v775_v11 = vpop.xlane.xlu0 %774 }
  0xb9   : > { %v783_v12 = vmul.f32 %v782_v10, %v775_v11 }
  0xbb   : > { %v784_v13 = vsub.f32 %v769_v2, %v783_v12 }
  0xbd   : > { %v785_v14 = vmul.f32 %v784_v13, %v784_v13 }
  0xbf   : > { %v786_v15 = vsel %vm772_vm0, %v785_v14, 0.0 }
  0xc0   : > { %787 = vadd.xlane.f32.xlu0 %v786_v15 }
 0x133   : > { %v788_v25 = vpop.xlane.xlu0 %787 }
 0x134   : > { %v789_v26 = vmul.f32 %v788_v25, %v782_v10 }
 0x136   : > { %v790_v27 = vadd.f32 1e-05, %v789_v26 }
 0x138   : > { %1719 = vrsqrt.f32 %v790_v27  ;;  %vm797_vm8 = vweird.f32 %v790_v27 }
 0x13e   : > { %v1720_v28 = vpop.eup %1719 }
 0x13f   : > { %v792_v29 = vmul.f32 %v1720_v28, %v790_v27  ;;  %vm798_vm7 = vweird.f32 %v1720_v28 }
 0x140   : > { %vm799_vm9 = vmor %vm797_vm8, %vm798_vm7 }
 0x141   : > { %v793_v30 = vmul.f32 %v1720_v28, %v792_v29 }
 0x143   : > { %v794_v31 = vmul.f32 0.5, %v793_v30 }
 0x145   : > { %v795_v32 = vsub.f32 1.5, %v794_v31 }
 0x147   : > { %v796_v33 = vmul.f32 %v1720_v28, %v795_v32 }
 0x149   : > { %v800_v35 = vsel %vm799_vm9, %v1720_v28, %v796_v33 }
 0x14a   : > { %v801_v37 = vmul.f32 %v800_v35, %v784_v13 }
 0x14c   : > { %v805_v38 = vmul.f32 %v1715_v34, %v801_v37 }
 0x14e   : > { %v809_v39 = vadd.f32 %v1716_v36, %v805_v38 }
 0x150   : > { %810 = vst.msk [vmem:[#allocation2] sm:$0xff] %vm772_vm0, %v809_v39 }
 0x151 PF: > { %vm829_vm10 = vcmask 261120   ;;  %v1844_v42 = vmov 32.0   ;;  %v1616_v54 = vld [vmem:[%s2040_s4 + $0x8] sm:$0xff]  ;;  %v1615_v55 = vld [vmem:[%s2040_s4] sm:$0xff]  ;;  %s2332_s4 = scalar_lea.vmem %s2267_s9, %s2026_s23  ;;  %s2333_s20 = scalar_lea.vmem %s2268_s10, %s2026_s23  ;;  %vm948_vm15 = vcmask 1043456   ;;  %vm910_vm0 = vcmask 130048  }
 0x152   : > { %1729 = vrcp.f32 %v1844_v42  ;;  %897 = vmatpush.bf16.msra.mxu0 %v1616_v54  ;;  %v1721_v1 = vld [vmem:[%s2332_s4] ss:$0 sm:$0xff]  ;;  %s2334_s24 = scalar_lea.vmem %s2264_s6, %s2026_s23  ;;  %s1845_s3 = smov 80   ;;  %v826_v21 = vld [vmem:[#allocation3] sm:$0xff]  ;;  %vm930_vm1 = vcmask 64512  }
 0x153   : > { %v1722_v4 = vld [vmem:[%s2333_s20] ss:$0 sm:$0xff]  ;;  %s1846_s22 = smov 64   ;;  %s1847_s19 = smov 96  }
 0x154   : > { %v1723_v8 = vld [vmem:[%s2334_s24] ss:$0 sm:$0xff]  ;;  %s1848_s26 = smov 48   ;;  %s1849_s25 = smov 112  }
 0x155   : > { %s2335_s28 = sld [smem:[#allocation20_spill]]  ;;  %s1850_s5 = smov 16  }
 0x156   : > { %898 = vmatpush.bf16.msra.mxu0 %v1615_v55  ;;  %s2336_s4 = scalar_lea.vmem %s2266_s8, %s2026_s23  ;;  %s2337_s21 = sld [smem:[#allocation28_spill]] }
 0x157   : > { %v2109_v40 = vld [vmem:[#allocation2] sm:$0xff] }
 0x158   : > { %v830_v41 = vsel %vm829_vm10, %v2109_v40, 0.0  ;;  %v1730_v43 = vpop.eup %1729 }
 0x159   : > { %831 = vadd.xlane.f32.xlu0 %v830_v41  ;;  %v834_v44 = vmul.f32 32.0, %v1730_v43  ;;  %vm838_vm11 = vweird.f32 %v1730_v43 }
 0x15b   : > { %v835_v45 = vsub.f32 1.0, %v834_v44  ;;  %v1618_v55 = vld [vmem:[%s2335_s28 + $0x8] sm:$0xff] }
 0x15c   : > { %1056 = vmatpush.bf16.msrb.mxu0 %v1618_v55  ;;  %s2338_s20 = scalar_lea.vmem %s2337_s21, %s2026_s23 }
 0x15d   : > { %v836_v46 = vmul.f32 %v1730_v43, %v835_v45 }
 0x15f   : > { %v837_v47 = vadd.f32 %v1730_v43, %v836_v46 }
 0x161   : > { %v2113_v48 = vsel %vm838_vm11, %v1730_v43, %v837_v47 }
 0x1cc   : > { %v832_v49 = vpop.xlane.xlu0 %831 }
 0x1cd   : > { %v840_v50 = vmul.f32 %v2113_v48, %v832_v49 }
 0x1cf   : > { %v841_v51 = vsub.f32 %v2109_v40, %v840_v50 }
 0x1d1   : > { %v842_v52 = vmul.f32 %v841_v51, %v841_v51 }
 0x1d3   : > { %v843_v53 = vsel %vm829_vm10, %v842_v52, 0.0 }
 0x1d4   : > { %844 = vadd.xlane.f32.xlu0 %v843_v53 }
 0x247   : > { %v845_v56 = vpop.xlane.xlu0 %844 }
 0x248   : > { %v846_v57 = vmul.f32 %v845_v56, %v2113_v48  ;;  %v1617_v56 = vld [vmem:[%s2335_s28] sm:$0xff] }
 0x249   : > { %1057 = vmatpush.bf16.msrb.mxu0 %v1617_v56 }
 0x24a   : > { %v847_v58 = vadd.f32 1e-05, %v846_v57 }
 0x24c   : > { %1731 = vrsqrt.f32 %v847_v58  ;;  %vm854_vm13 = vweird.f32 %v847_v58 }
 0x252   : > { %v1732_v59 = vpop.eup %1731 }
 0x253   : > { %v849_v60 = vmul.f32 %v1732_v59, %v847_v58  ;;  %vm855_vm12 = vweird.f32 %v1732_v59 }
 0x254   : > { %vm856_vm14 = vmor %vm854_vm13, %vm855_vm12 }
 0x255   : > { %v850_v61 = vmul.f32 %v1732_v59, %v849_v60 }
 0x257   : > { %v851_v62 = vmul.f32 0.5, %v850_v61 }
 0x259   : > { %v852_v63 = vsub.f32 1.5, %v851_v62  ;;  %v1724_v62 = vld [vmem:[%s2336_s4] ss:$0 sm:$0xff] }
 0x25b   : > { %v853_v0 = vmul.f32 %v1732_v59, %v852_v63 }
 0x25d   : > { %v857_v2 = vsel %vm856_vm14, %v1732_v59, %v853_v0 }
 0x25e   : > { %v858_v3 = vmul.f32 %v857_v2, %v841_v51 }
 0x260   : > { %v862_v5 = vmul.f32 %v1721_v1, %v858_v3 }
 0x262   : > { %v866_v6 = vadd.f32 %v1722_v4, %v862_v5 }
 0x264   : > { %v867_v7 = vpack.c.bf16 %v866_v6, %v866_v6 }
 0x266   : > { %1551 = vmatmul.msk.bf16.vlgmr.msra.gmra.mxu0 %vm829_vm10, %v867_v7 }
 0x2e3   : > { %v900_v9 = vpop.f32.mrf.mxu0 }
 0x2e4   : > { %v901_v10 = vadd.f32 %v1723_v8, %v900_v9  ;;  %v1620_v9 = vld [vmem:[%s2074_s0 + $0x8] sm:$0xff] }
 0x2e6   : > { %v904_v11 = vpack.c.bf16 %v901_v10, %v901_v10  ;;  %v1619_v10 = vld [vmem:[%s2074_s0] sm:$0xff] }
 0x2e8   : > { %v906_v12 = vunpack.c.l.b16 %v904_v11 }
 0x2ea   : > { %v907_v13 = vpack.c.b16 %v906_v12, %v906_v12 }
 0x2eb   : > { %v902_v14 = vpop.f32.mrf.mxu0 }
 0x2ec   : > { %967 = vrot.lane.b32.xlu0 %v907_v13, %s1845_s3  ;;  %943 = vrot.lane.b32.xlu2 %v907_v13, %s1846_s22 }
 0x2ed   : > { %908 = vrot.lane.b32.xlu1 %v907_v13, %s1847_s19 }
 0x346   : > { %v944_v15 = vpop.permute.xlu2 %943 }
 0x347   : > { %v950_v16 = vsel %vm948_vm15, %v944_v15, 0 }
 0x348   : > { %959 = vmatpush.bf16.msra.mxu2 %v950_v16 }
 0x35e   : > { %v968_v17 = vpop.permute.xlu0 %967 }
 0x35f   : > { %v909_v18 = vpop.permute.xlu1 %908  ;;  %v973_v19 = vsel %vm910_vm0, %v968_v17, 0 }
 0x360   : > { %v915_v20 = vsel %vm910_vm0, %v909_v18, 0  ;;  %982 = vmatpush.bf16.xpose.msrb.mxu2 %v973_v19 }
 0x361   : > { %924 = vmatpush.bf16.xpose.msra.mxu1 %v915_v20 }
 0x368   : > { %1552 = vmatmul.msk.bf16.vlgmr.msra.gmra.mxu1 %vm910_vm0, %v904_v11 }
 0x369   : > { %1126 = vmatpush.bf16.msrb.mxu1 %v1620_v9 }
 0x36d   : > { %1127 = vmatpush.bf16.msrb.mxu1 %v1619_v10 }
 0x3e5   : > { %v926_v22 = vpop.f32.mrf.mxu1 }
 0x3e6   : > { %v927_v23 = vadd.f32 %v926_v22, %v826_v21 }
 0x3e8   : > { %v931_v24 = vsel %vm930_vm1, %v927_v23, -inf }
 0x3e9   : > { %932 = vmax.xlane.f32.xlu1 %v931_v24 }
 0x3ed   : > { %v928_v25 = vpop.f32.mrf.mxu1 }
 0x402   : > { %1000 = vrot.lane.b32.xlu1 %v907_v13, %s1848_s26 }
 0x45c   : > { %v933_v26 = vpop.xlane.xlu1 %932 }
 0x45d   : > { %v934_v27 = vsub.f32 %v927_v23, %v933_v26  ;;  %v1726_v23 = vld [vmem:[%s745_s16] ss:$0 sm:$0xff] }
 0x45f   : > { %v935_v28 = vmul.f32 1.442695, %v934_v27  ;;  %v1626_v27 = vld [vmem:[%s2088_s11 + $0x28] sm:$0xff] }
 0x461   : > { %1733 = vpow2.f32 %v935_v28  ;;  %v1625_v28 = vld [vmem:[%s2088_s11 + $0x20] sm:$0xff] }
 0x467   : > { %v1734_v29 = vpop.eup %1733 }
 0x468   : > { %v937_v30 = vsel %vm930_vm1, %v1734_v29, 0.0 }
 0x469   : > { %938 = vadd.xlane.f32.xlu2 %v937_v30  ;;  %v1623_v30 = vld [vmem:[%s2088_s11 + $0x10] sm:$0xff] }
 0x474   : > { %v1001_v34 = vpop.permute.xlu1 %1000 }
 0x475   : > { %v1006_v36 = vsel %vm948_vm15, %v1001_v34, 0 }
 0x481   : > { %965 = vrot.lane.b32.xlu2 %v907_v13, %s1849_s25  ;;  %v1627_v13 = vld [vmem:[%s2088_s11 + $0x30] sm:$0xff] }
 0x4dc   : > { %v939_v31 = vpop.xlane.xlu2 %938 }
 0x4dd   : > { %1735 = vrcp.f32 %v939_v31  ;;  %v1622_v31 = vld [vmem:[%s2088_s11 + $0x8] sm:$0xff] }
 0x4e3   : > { %v1736_v32 = vpop.eup %1735 }
 0x4e4   : > { %v941_v33 = vmul.f32 %v1736_v32, %v1734_v29  ;;  %v966_v37 = vpop.permute.xlu2 %965  ;;  %v1624_v29 = vld [vmem:[%s2088_s11 + $0x18] sm:$0xff]  ;;  %v1621_v32 = vld [vmem:[%s2088_s11] sm:$0xff] }
 0x4e6   : > { %v942_v35 = vpack.c.bf16 %v941_v33, %v941_v33  ;;  %v1727_v33 = vld [vmem:[%s753_s30] ss:$0 sm:$0xff]  ;;  %s2340_s30 = sld [smem:[#allocation10_spill]] }
 0x4e8   : > { %1553 = vmatmul.msk.bf16.vlgmr.msra.gmra.mxu2 %vm930_vm1, %v942_v35 }
 0x4e9   : > { %1015 = vmatpush.bf16.msra.mxu2 %v1006_v36 }
 0x4ec   : > { %p1606_p1 = scmp.ne.s32.totalorder %s2340_s30, 1 }
 0x4ed   : > { %s1853_s23 = smov (!%p1606_p1), 32   ;;  %s1855_s19 = smov (!%p1606_p1), 96  }
 0x4f8   : > { %1554 = vmatmul.msk.bf16.vlgmr.msrb.gmra.mxu2 %vm910_vm0, %v966_v37 }
 0x56b   : > { %v961_v38 = vpop.f32.mrf.mxu2 }
 0x573   : > { %v963_v39 = vpop.f32.mrf.mxu2 }
 0x57b   : > { %v984_v41 = vpop.f32.mrf.mxu2 }
 0x57c   : > { %v985_v42 = vadd.f32 %v984_v41, %v826_v21 }
 0x57e   : > { %v988_v43 = vsel %vm930_vm1, %v985_v42, -inf }
 0x57f   : > { %989 = vmax.xlane.f32.xlu0 %v988_v43 }
 0x583   : > { %v986_v44 = vpop.f32.mrf.mxu2 }
 0x5f2   : > { %v990_v45 = vpop.xlane.xlu0 %989 }
 0x5f3   : > { %v991_v46 = vsub.f32 %v985_v42, %v990_v45 }
 0x5f5   : > { %v992_v47 = vmul.f32 1.442695, %v991_v46 }
 0x5f7   : > { %1737 = vpow2.f32 %v992_v47 }
 0x5fd   : > { %v1738_v49 = vpop.eup %1737 }
 0x5fe   : > { %v994_v50 = vsel %vm930_vm1, %v1738_v49, 0.0 }
 0x5ff   : > { %995 = vadd.xlane.f32.xlu2 %v994_v50 }
 0x672   : > { %v996_v51 = vpop.xlane.xlu2 %995 }
 0x673   : > { %1739 = vrcp.f32 %v996_v51 }
 0x679   : > { %v1740_v52 = vpop.eup %1739 }
 0x67a   : > { %v998_v53 = vmul.f32 %v1740_v52, %v1738_v49  ;;  %v1728_v49 = vld [vmem:[%s761_s18] ss:$0 sm:$0xff]  ;;  %s1854_s18 = smov (!%p1606_p1), 64  }
 0x67c   : > { %v999_v54 = vpack.c.bf16 %v998_v53, %v998_v53 }
 0x67e   : > { %1555 = vmatmul.msk.bf16.vlgmr.msra.gmra.mxu2 %vm930_vm1, %v999_v54 }
 0x701   : > { %v1017_v57 = vpop.f32.mrf.mxu2 }
 0x702   : > { %1022 = vrot.lane.b32.xlu1 %v1017_v57, %s1850_s5 }
 0x709   : > { %v1019_v58 = vpop.f32.mrf.mxu2 }
 0x774   : > { %v1023_v59 = vpop.permute.xlu1 %1022 }
 0x775   : > { %v1025_v60 = vsel %vm910_vm0, %v961_v38, %v1023_v59 }
 0x776   : > { %v1026_v61 = vpack.c.bf16 %v1025_v60, %v1025_v60 }
 0x778   : > { %1564 = vmatmul.msk.bf16.vlgmr.msrb.gmra.mxu0 %vm829_vm10, %v1026_v61 }
 0x7f5   : > { %v1059_v63 = vpop.f32.mrf.mxu0 }
 0x7f6   : > { %v1060_v0 = vadd.f32 %v1724_v62, %v1059_v63 }
 0x7f8   : > { %v2159_v1 = vadd.f32 %v1060_v0, %v2109_v40  ;;  %v1628_v40 = vld [vmem:[%s2088_s11 + $0x38] sm:$0xff] }
 0x7f9   : > { %1211 = vmatpush.bf16.msra.mxu3 %v1628_v40 }
 0x7fa   : > { %v1066_v2 = vsel %vm829_vm10, %v2159_v1, 0.0 }
 0x7fb   : > { %1067 = vadd.xlane.f32.xlu0 %v1066_v2 }
 0x7fd   : > { %v1061_v3 = vpop.f32.mrf.mxu0  ;;  %1212 = vmatpush.bf16.msra.mxu3 %v1627_v13 }
 0x801   : > { %1213 = vmatpush.bf16.msra.mxu3 %v1626_v27 }
 0x805   : > { %1214 = vmatpush.bf16.msra.mxu3 %v1625_v28 }
 0x809   : > { %1215 = vmatpush.bf16.msra.mxu3 %v1624_v29 }
 0x80d   : > { %1216 = vmatpush.bf16.msra.mxu3 %v1623_v30 }
 0x811   : > { %1217 = vmatpush.bf16.msra.mxu3 %v1622_v31 }
 0x815   : > { %1218 = vmatpush.bf16.msra.mxu3 %v1621_v32 }
 0x86e   : > { %v1068_v4 = vpop.xlane.xlu0 %1067 }
 0x86f   : > { %v1069_v5 = vmul.f32 %v1068_v4, %v2113_v48 }
 0x871   : > { %v1070_v6 = vsub.f32 %v2159_v1, %v1069_v5 }
 0x873   : > { %v1071_v7 = vmul.f32 %v1070_v6, %v1070_v6 }
 0x875   : > { %v1072_v8 = vsel %vm829_vm10, %v1071_v7, 0.0 }
 0x876   : > { %1073 = vadd.xlane.f32.xlu2 %v1072_v8 }
 0x8e9   : > { %v1074_v11 = vpop.xlane.xlu2 %1073 }
 0x8ea   : > { %v1075_v12 = vmul.f32 %v1074_v11, %v2113_v48  ;;  %v1725_v48 = vld [vmem:[%s2338_s20] ss:$0 sm:$0xff] }
 0x8ec   : > { %v1076_v14 = vadd.f32 1e-05, %v1075_v12 }
 0x8ee   : > { %1741 = vrsqrt.f32 %v1076_v14  ;;  %vm1083_vm3 = vweird.f32 %v1076_v14 }
 0x8f4   : > { %v1742_v15 = vpop.eup %1741 }
 0x8f5   : > { %v1078_v16 = vmul.f32 %v1742_v15, %v1076_v14  ;;  %vm1084_vm2 = vweird.f32 %v1742_v15 }
 0x8f6   : > { %vm1085_vm4 = vmor %vm1083_vm3, %vm1084_vm2 }
 0x8f7   : > { %v1079_v17 = vmul.f32 %v1742_v15, %v1078_v16 }
 0x8f9   : > { %v1080_v18 = vmul.f32 0.5, %v1079_v17 }
 0x8fb   : > { %v1081_v19 = vsub.f32 1.5, %v1080_v18 }
 0x8fd   : > { %v1082_v20 = vmul.f32 %v1742_v15, %v1081_v19 }
 0x8ff   : > { %v1086_v21 = vsel %vm1085_vm4, %v1742_v15, %v1082_v20 }
 0x900   : > { %v1087_v22 = vmul.f32 %v1086_v21, %v1070_v6 }
 0x902   : > { %v1091_v24 = vmul.f32 %v1725_v48, %v1087_v22 }
 0x904   : > { %v1095_v25 = vadd.f32 %v1726_v23, %v1091_v24 }
 0x906   : > { %v1096_v26 = vpack.c.bf16 %v1095_v25, %v1095_v25 }
 0x908   : > { %1573 = vmatmul.msk.bf16.vlgmr.msrb.gmra.mxu1 %vm829_vm10, %v1096_v26 }
 0x985   : > { %v1129_v34 = vpop.f32.mrf.mxu1 }
 0x986   : > { %v1130_v35 = vadd.f32 %v1727_v33, %v1129_v34 }
 0x988   : > { %v1134_v36 = vmul.f32 %v1130_v35, %v1130_v35  ;;  %v1133_v44 = vmul.f32 0.5, %v1130_v35 }
 0x98a   : > { %v1135_v37 = vmul.f32 %v1134_v36, %v1130_v35 }
 0x98c   : > { %v1136_v38 = vmul.f32 0.044715, %v1135_v37 }
 0x98d   : > { %v1131_v39 = vpop.f32.mrf.mxu1 }
 0x98e   : > { %v1137_v41 = vadd.f32 %v1136_v38, %v1130_v35 }
 0x990   : > { %v1138_v42 = vmul.f32 0.7978846, %v1137_v41 }
 0x992   : > { %1743 = vtanh.f32 %v1138_v42 }
 0x998   : > { %v1744_v43 = vpop.eup %1743 }
 0x999   : > { %v1140_v45 = vadd.f32 1.0, %v1744_v43 }
 0x99b   : > { %v1141_v46 = vmul.f32 %v1140_v45, %v1133_v44 }
 0x99d   : > { %v1142_v47 = vpack.c.bf16 %v1141_v46, %v1141_v46 }
 0x99f   : > { %1219 = vmatmul.bf16.vlgmr.msra.gmra.mxu3 %v1142_v47 }
 0xa22   : > { %v1220_v50 = vpop.f32.mrf.mxu3 }
 0xa23   : > { %v1221_v51 = vadd.f32 %v1728_v49, %v1220_v50 }
 0xa25   : > { %v1224_v52 = vadd.f32 %v1221_v51, %v2159_v1 }
 0xa26   : > { %1229 = sbr.rel (%p1606_p1) target bundleno = 2744 (0xab8), region = 96 }
 0xa27   : > { %1225 = vst.msk [vmem:[#allocation2] sm:$0xff] %vm829_vm10, %v1224_v52 }
 0xa2a   : > { %v1222_v53 = vpop.f32.mrf.mxu3 }
 0xa2b   : > { %v1230_v54 = vrot.slane %v1224_v52, 4  ;;  %vm1231_vm5 = vcmask 1047556   ;;  %v1851_v55 = vmov 1983009808   ;;  %v1852_v57 = vmov 1934713408  }
 0xa2c   : > { %v1234_v56 = vunpack.c.l.s4 %v1851_v55  ;;  %v1244_v58 = vunpack.c.l.s4 %v1852_v57  ;;  %vm1294_vm6 = vcmask 523264   ;;  %v1307_v19 = vlaneseq }
 0xa2d   : > { %v1232_v59 = vsel %vm1231_vm5, 0.0, %v1230_v54  ;;  %vm1296_vm7 = vcmask 785408   ;;  %vm1304_vm8 = vcmask 1040384  }
 0xa2e   : > { %v1235_v60 = vunpack.c.0.s8 %v1234_v56  ;;  %v1245_v61 = vunpack.c.0.s8 %v1244_v58  ;;  %vm1309_vm9 = vcmp.lt.s32.totalorder %v1307_v19, 256 }
 0xa30   : > { %v1240_v62 = vperm.slane %v1232_v59, %v1235_v60  ;;  %v1236_v63 = vperm.slane %v1224_v52, %v1235_v60 }
 0xa32   : > { %v1256_v0 = vperm.slane %v1240_v62, %v1245_v61  ;;  %v1246_v1 = vperm.slane %v1236_v63, %v1245_v61  ;;  %v1251_v2 = vrot.slane %v1240_v62, 4  ;;  %v1241_v3 = vrot.slane %v1236_v63, 4 }
 0xa34   : > { %v1265_v4 = vrot.slane %v1256_v0, 4  ;;  %v1261_v5 = vrot.slane %v1246_v1, 4  ;;  %v1252_v6 = vsel %vm1231_vm5, 0.0, %v1251_v2  ;;  %v1242_v7 = vsel %vm1231_vm5, 0.0, %v1241_v3 }
 0xa35   : > { %v1260_v8 = vperm.slane %v1252_v6, %v1245_v61  ;;  %v1250_v9 = vperm.slane %v1242_v7, %v1245_v61 }
 0xa36   : > { %v1266_v10 = vsel %vm1231_vm5, 0.0, %v1265_v4  ;;  %v1262_v40 = vsel %vm1231_vm5, 0.0, %v1261_v5 }
 0xa37   : > { %1282 = vrot.lane.b32.xlu0 %v1266_v10, %s1853_s23  ;;  %1270 = vrot.lane.b32.xlu1 %v1262_v40, %s1853_s23  ;;  %v1267_v11 = vrot.slane %v1260_v8, 4  ;;  %v1263_v12 = vrot.slane %v1250_v9, 4 }
 0xa38   : > { %1274 = vrot.lane.b32.xlu2 %v1250_v9, %s1854_s18 }
 0xa39   : > { %v1268_v13 = vsel %vm1231_vm5, 0.0, %v1267_v11  ;;  %v1264_v14 = vsel %vm1231_vm5, 0.0, %v1263_v12 }
 0xa3f   : > { %1286 = vrot.lane.b32.xlu0 %v1260_v8, %s1854_s18  ;;  %1290 = vrot.lane.b32.xlu1 %v1268_v13, %s1855_s19 }
 0xa40   : > { %1278 = vrot.lane.b32.xlu2 %v1264_v14, %s1855_s19 }
 0xa92   : > { %v1275_v15 = vpop.permute.xlu2 %1274 }
 0xa9a   : > { %v1279_v23 = vpop.permute.xlu2 %1278 }
 0xaa9   : > { %v1283_v16 = vpop.permute.xlu0 %1282  ;;  %v1271_v17 = vpop.permute.xlu1 %1270 }
 0xaaa   : > { %v1293_v18 = vsel %vm829_vm10, %v1246_v1, %v1271_v17  ;;  %v1298_v20 = vsel %vm829_vm10, %v1256_v0, %v1283_v16 }
 0xaab   : > { %v1295_v22 = vsel %vm1294_vm6, %v1293_v18, %v1275_v15 }
 0xaac   : > { %v1297_v27 = vsel %vm1296_vm7, %v1295_v22, %v1279_v23 }
 0xab1   : > { %v1287_v48 = vpop.permute.xlu0 %1286  ;;  %v1291_v21 = vpop.permute.xlu1 %1290 }
 0xab2   : > { %v1299_v24 = vsel %vm1294_vm6, %v1298_v20, %v1287_v48 }
 0xab3   : > { %v1300_v25 = vsel %vm1296_vm7, %v1299_v24, %v1291_v21 }
 0xab4   : > { %v1303_v26 = vrot.slane %v1300_v25, 7 }
 0xab6   : > { %v1305_v28 = vsel %vm1304_vm8, %v1297_v27, %v1303_v26 }
 0xab7   : > { %1311 = vst.msk [vmem:[%s710_s27] sm:$0x3] %vm1309_vm9, %v1305_v28 }
 0xab8 PF: > { %s2341_s26 = sld [smem:[#allocation11_spill]]  ;;  %s1325_s7 = sshll.u32 %s710_s27, 4  ;;  %s1326_s7 = int_to_ptr.vmem [resolvable:$true] %s1325_s7 }
 0xab9   : > { %s2342_s25 = sld [smem:[#allocation8_spill]] }
 0xaba   : > { %s2344_s4 = sld [smem:[#allocation31_spill]] }
 0xabe   : > { %s1608_s5 = sshll.u32 %s2341_s26, 1 }
 0xabf   : > { %s2345_s20 = sand.u32 1, %s2342_s25  }
 0xac0   : > { %s1323_s0 = scalar_lea.hbm %s2344_s4, %s1608_s5  ;;  %s1313_s17 = scalar_lea.sflag [#allocation5], %s2345_s20 }
 0xac1   : > { %s1327_s21 = sshll.u32 %s1323_s0, 4  ;;  %s1765_s3 = scalar_lea.hbm %s2344_s4, 4  ;;  %s1328_s21 = int_to_ptr.hbm [resolvable:$true] %s1327_s21 }
 0xac2   : > { %s1759_s1 = sshra.s32 %s1328_s21, 4  ;;  %s1760_s1 = int_to_ptr.hbm [resolvable:$true] %s1759_s1 }
 0xac3   : > { %s1761_s24 = scalar_lea.hbm %s1760_s1, 2  ;;  %p1766_p6 = scmp.lt.s32.totalorder %s1760_s1, %s2344_s4 }
 0xac4   : > { %p1762_p2 = scmp.ne.s32.totalorder %s1760_s1, %s1761_s24  ;;  %p1767_p7 = scmp.lt.s32.totalorder %s1765_s3, %s1761_s24 }
 0xac6   : > { %p1763_p4 = pnand %p1762_p2, %p1995_p3  ;;  %p1768_p8 = por %p1767_p7, %p1766_p6 }
 0xac8   : > { %p1764_p5 = pneg %p1763_p4 }
 0xaca   : > { %p1769_p10 = pnand %p1768_p8, %p1764_p5 }
 0xacc   : > { %1772 = shalt.err (!%p1769_p10)
}
 0xacd   : > { %1629 = dma.vmem_to_hbm [thread:$0]  (%p1995_p3), %s1326_s7, 32, %s1328_s21, %s1313_s17  }
 0xace PF: > { %s2346_s29 = sld [smem:[#allocation14_spill]] }
 0xacf   : > { %s2347_s27 = sld [smem:[#allocation7_spill]] }
 0xad4   : > { %p1635_p11 = scmp.ge.s32.totalorder %s2346_s29, 2 }
 0xad5   : > { %s1339_s18 = sand.u32 1, %s2347_s27  }
 0xad6   : > { %p1632_p12 = pnand %p1635_p11, %p2005_p9  ;;  %s1340_s19 = scalar_lea.sflag [#allocation5], %s1339_s18 }
 0xad8   : > { %p1633_p13 = pneg %p1632_p12 }
 0xada   : > { %1806 = dma.done.wait (%p1633_p13), %s1340_s19, 32  }
 0xadb   : > { %1808 = vsyncadd (%p1633_p13), %s1340_s19, 4294967264  ;;  %s30_s30 = sadd.s32 1, %s2346_s29   ;;  %s2349_s24 = sld [smem:[#allocation8_spill]] }
 0xadc   : > { %p27_p0 = scmp.ge.s32.totalorder %s30_s30, 6   ;;  %s2350_s25 = sld [smem:[#allocation9_spill]] }
 0xadd   : > { %s2351_s26 = sld [smem:[#allocation19_spill]] }
 0xade   : > { %s2352_s27 = sld [smem:[#allocation12_spill]]  ;;  %29 = sbr.rel (!%p27_p0) target bundleno = 17 (0x11), region = 170 }
 0xadf   : > { %s2353_s28 = sld [smem:[#allocation13_spill]] }
 0xae0   : > { %s2354_s29 = sld [smem:[#allocation15_spill]] }
 0xae1   : > { %s2355_s0 = sld [smem:[#allocation17_spill]] }
 0xae3   :  { %1346 = vsyncpa [#allocation5], 1 }
 0xae4   :  { %1348 = vsyncpa [#allocation5 + $0x1], 1 }

</bundles_post_ra>
